<compile_context>
chip_gen: v6e
topology: v6e:2x2x1
jax: 0.10.0
libtpu: 0.0.40
codegen_flags: <defaults>
</compile_context>

<pallas_src>
import functools

import jax
import jax.numpy as jnp
from jax.experimental import pallas as pl
from jax.experimental.pallas import tpu as pltpu


def _pick_tile(dim, preferred):
    """Largest tile dividing `dim` that is <= preferred and a multiple of 8,
    falling back to the full dim (always legal as a block extent)."""
    if dim <= preferred:
        return dim
    for t in range(preferred, 7, -1):
        if dim % t == 0 and t % 8 == 0:
            return t
    # TODO(synk): for awkward L (e.g. UViT's +1 token) pad to a multiple of 128
    # and mask padded KV columns to -inf instead of falling back to a full-L tile.
    return dim


# ----------------------- Kernel 1: fused QKV projection (resident W) -----------------
def _qkv_proj_kernel(x_ref, w_ref, q_ref, k_ref, v_ref, *, scale, num_heads):
    # x_ref : (1, Tl, C)   w_ref : (C, 3C) resident   q/k/v_ref : (1, H, Tl, D)
    C = x_ref.shape[2]
    D = C // num_heads
    x = x_ref[0]                                                     # (Tl, C) bf16
    qkv = jnp.dot(x, w_ref[...], preferred_element_type=jnp.float32)  # (Tl, 3C) f32
    # Columns are ordered (K, H, D): q = [0, C), k = [C, 2C), v = [2C, 3C).
    for h in range(num_heads):
        q_ref[0, h] = (qkv[:, h * D:(h + 1) * D] * scale).astype(q_ref.dtype)
        k_ref[0, h] = qkv[:, C + h * D:C + (h + 1) * D].astype(k_ref.dtype)
        v_ref[0, h] = qkv[:, 2 * C + h * D:2 * C + (h + 1) * D].astype(v_ref.dtype)


# ----------------------------- Kernel 2: flash attention ----------------------------
def _flash_attn_kernel(q_ref, k_ref, v_ref, o_ref, m_scr, l_scr, acc_scr):
    # q_ref : (1, 1, Tq, D)   k/v_ref : (1, 1, Tk, D)   o_ref : (1, 1, Tq, D)
    kv_i = pl.program_id(3)

    @pl.when(kv_i == 0)
    def _init():
        m_scr[...] = jnp.full_like(m_scr, -jnp.inf)
        l_scr[...] = jnp.zeros_like(l_scr)
        acc_scr[...] = jnp.zeros_like(acc_scr)

    q = q_ref[0, 0]                                                  # (Tq, D), pre-scaled
    k = k_ref[0, 0]                                                  # (Tk, D)
    s = jax.lax.dot_general(q, k, (((1,), (1,)), ((), ())),
                            preferred_element_type=jnp.float32)      # (Tq, Tk) f32

    m_prev = m_scr[...]
    m_new = jnp.maximum(m_prev, jnp.max(s, axis=-1, keepdims=True))
    alpha = jnp.exp(m_prev - m_new)
    p = jnp.exp(s - m_new)                                           # f32 softmax stats
    l_scr[...] = alpha * l_scr[...] + jnp.sum(p, axis=-1, keepdims=True)
    acc_scr[...] = alpha * acc_scr[...] + jnp.dot(
        p.astype(v_ref.dtype), v_ref[0, 0], preferred_element_type=jnp.float32)
    m_scr[...] = m_new

    @pl.when(kv_i == pl.num_programs(3) - 1)
    def _finalize():
        inv_l = pl.reciprocal(l_scr[...], approx=True)
        o_ref[0, 0] = (acc_scr[...] * inv_l).astype(o_ref.dtype)


# ----------------- Kernel 3: output projection (resident W, in-kernel head loop) ----
def _proj_kernel(a_ref, w_ref, b_ref, o_ref, *, num_heads):
    # a_ref : (1, H, Tl, D)   w_ref : (H, D, C) resident   b_ref : (1, C) f32
    # o_ref : (1, Tl, C)
    acc = jnp.dot(a_ref[0, 0], w_ref[0], preferred_element_type=jnp.float32)
    for h in range(1, num_heads):
        acc = acc + jnp.dot(a_ref[0, h], w_ref[h],
                            preferred_element_type=jnp.float32)
    o_ref[0] = (acc + b_ref[...]).astype(o_ref.dtype)


# --------------------------------- Parameter packing --------------------------------
def pack_attention_params(w_qkv, w_proj, b_proj, *, num_heads,
                          compute_dtype=jnp.bfloat16):
    """One-time repack of weights (hoisted out of the per-call forward path)."""
    C = w_proj.shape[0]
    D = C // num_heads
    w_qkv_p = w_qkv.astype(compute_dtype)                              # (C, 3C)
    w_proj_p = w_proj.astype(compute_dtype).reshape(num_heads, D, C)   # (H, D, C)
    b_proj_p = b_proj.reshape(1, C).astype(jnp.float32)                # (1, C)
    return w_qkv_p, w_proj_p, b_proj_p


# ------------------------------------ Wrapper ---------------------------------------
def attention_pallas(x, w_qkv_p, w_proj_p, b_proj_p, *, num_heads,
                     compute_dtype=jnp.bfloat16,
                     q_tile=512, kv_tile=1024, row_tile=256):
    B, L, C = x.shape
    H = num_heads
    D = C // H
    scale = D ** (-0.5)

    Tq = _pick_tile(L, q_tile)
    Tk = _pick_tile(L, kv_tile)
    Tl = _pick_tile(L, row_tile)
    nQ, nK, nL = L // Tq, L // Tk, L // Tl

    out_dtype = x.dtype
    xc = x.astype(compute_dtype)

    # ---- Kernel 1: fused QKV projection, W_qkv resident (constant index_map). ----
    q, k, v = pl.pallas_call(
        functools.partial(_qkv_proj_kernel, scale=scale, num_heads=H),
        out_shape=tuple(jax.ShapeDtypeStruct((B, H, L, D), compute_dtype)
                        for _ in range(3)),
        grid_spec=pltpu.PrefetchScalarGridSpec(
            num_scalar_prefetch=0,
            grid=(B, nL),
            in_specs=[
                pl.BlockSpec((1, Tl, C), lambda b, li: (b, li, 0)),
                pl.BlockSpec((C, 3 * C), lambda b, li: (0, 0)),      # resident weight
            ],
            out_specs=[
                pl.BlockSpec((1, H, Tl, D), lambda b, li: (b, 0, li, 0)),
                pl.BlockSpec((1, H, Tl, D), lambda b, li: (b, 0, li, 0)),
                pl.BlockSpec((1, H, Tl, D), lambda b, li: (b, 0, li, 0)),
            ],
        ),
        compiler_params=pltpu.CompilerParams(
            dimension_semantics=("parallel", "parallel")),
    )(xc, w_qkv_p)

    # ---- Kernel 2: flash attention, kv-tile as innermost reduction axis. ----
    attn = pl.pallas_call(
        _flash_attn_kernel,
        out_shape=jax.ShapeDtypeStruct((B, H, L, D), compute_dtype),
        grid_spec=pltpu.PrefetchScalarGridSpec(
            num_scalar_prefetch=0,
            grid=(B, H, nQ, nK),
            in_specs=[
                pl.BlockSpec((1, 1, Tq, D), lambda b, h, qi, ki: (b, h, qi, 0)),
                pl.BlockSpec((1, 1, Tk, D), lambda b, h, qi, ki: (b, h, ki, 0)),
                pl.BlockSpec((1, 1, Tk, D), lambda b, h, qi, ki: (b, h, ki, 0)),
            ],
            out_specs=pl.BlockSpec((1, 1, Tq, D),
                                   lambda b, h, qi, ki: (b, h, qi, 0)),
            scratch_shapes=[
                pltpu.VMEM((Tq, 1), jnp.float32),    # running max
                pltpu.VMEM((Tq, 1), jnp.float32),    # running denom
                pltpu.VMEM((Tq, D), jnp.float32),    # output accumulator
            ],
        ),
        compiler_params=pltpu.CompilerParams(
            dimension_semantics=("parallel", "parallel", "parallel", "arbitrary")),
    )(q, k, v)

    # ---- Kernel 3: output projection, W_proj resident, head loop inside kernel. ----
    out = pl.pallas_call(
        functools.partial(_proj_kernel, num_heads=H),
        out_shape=jax.ShapeDtypeStruct((B, L, C), out_dtype),
        grid_spec=pltpu.PrefetchScalarGridSpec(
            num_scalar_prefetch=0,
            grid=(B, nL),
            in_specs=[
                pl.BlockSpec((1, H, Tl, D), lambda b, li: (b, 0, li, 0)),
                pl.BlockSpec((H, D, C), lambda b, li: (0, 0, 0)),    # resident weight
                pl.BlockSpec((1, C), lambda b, li: (0, 0)),
            ],
            out_specs=pl.BlockSpec((1, Tl, C), lambda b, li: (b, li, 0)),
        ),
        compiler_params=pltpu.CompilerParams(
            dimension_semantics=("parallel", "parallel")),
    )(attn, w_proj_p, b_proj_p)

    return out


def attention_ref(x, w_qkv, w_proj, b_proj, *, num_heads):
    """Pure-JAX reference matching the PyTorch forward (non-xformers branch)."""
    B, L, C = x.shape
    D = C // num_heads
    scale = D ** (-0.5)
    qkv = x @ w_qkv                                           # (B, L, 3C)
    qkv = qkv.reshape(B, L, 3, num_heads, D)
    qkv = jnp.transpose(qkv, (2, 0, 3, 1, 4))                 # (3, B, H, L, D)
    q, k, v = qkv[0], qkv[1], qkv[2]
    attn = jnp.einsum("bhld,bhmd->bhlm", q, k) * scale
    attn = jax.nn.softmax(attn, axis=-1)
    out = jnp.einsum("bhlm,bhmd->bhld", attn, v)              # (B, H, L, D)
    out = jnp.transpose(out, (0, 2, 1, 3)).reshape(B, L, C)
    return out @ w_proj + b_proj.reshape(1, 1, C)


if __name__ == "__main__":
    B, L, C = 2, 8, 32
    num_heads = 8

    key = jax.random.PRNGKey(0)
    kx, kqkv, kproj, kb = jax.random.split(key, 4)

    x = jax.random.normal(kx, (B, L, C), dtype=jnp.float32)
    # qkv_bias=False in the module's default config -> no qkv bias.
    w_qkv = jax.random.normal(kqkv, (C, 3 * C), dtype=jnp.float32) * 0.05
    w_proj = jax.random.normal(kproj, (C, C), dtype=jnp.float32) * 0.05
    b_proj = jax.random.normal(kb, (1, C), dtype=jnp.float32) * 0.01

    # One-time weight packing (hoisted out of the forward path).
    w_qkv_p, w_proj_p, b_proj_p = pack_attention_params(
        w_qkv, w_proj, b_proj, num_heads=num_heads)

    out = attention_pallas(x, w_qkv_p, w_proj_p, b_proj_p, num_heads=num_heads)
    out = jax.block_until_ready(out)

    ref = attention_ref(x, w_qkv, w_proj, b_proj, num_heads=num_heads)
    assert out.shape == (B, L, C)
    max_err = float(jnp.max(jnp.abs(out.astype(jnp.float32) - ref)))
    # bf16 MXU operands with f32 accumulation / softmax stats -> relaxed tolerance.
    assert max_err < 3e-2, f"mismatch vs reference: max abs err {max_err}"

    print("KERNEL_OK")
</pallas_src>

<mosaic_0001>
module attributes {stable_mosaic.version = 11 : i64} {
  func.func @_qkv_proj_kernel(%arg0: i32, %arg1: i32, %arg2: memref<1x8x32xbf16, #tpu.memory_space<vmem>>, %arg3: memref<32x96xbf16, #tpu.memory_space<vmem>>, %arg4: memref<1x8x8x4xbf16, #tpu.memory_space<vmem>>, %arg5: memref<1x8x8x4xbf16, #tpu.memory_space<vmem>>, %arg6: memref<1x8x8x4xbf16, #tpu.memory_space<vmem>>) attributes {dimension_semantics = [#tpu.dimension_semantics<parallel>, #tpu.dimension_semantics<parallel>], iteration_bounds = array<i64: 2, 1>, scalar_prefetch = 0 : i64, scratch_operands = 0 : i64, tpu.core_type = #tpu.core_type<tc>, window_params = [{transform_indices = @transform_0, window_bounds = array<i64: 1, 8, 32>}, {pipeline_mode = #tpu.pipeline_mode<synchronous>, transform_indices = @transform_1, window_bounds = array<i64: 32, 96>}, {transform_indices = @transform_2, window_bounds = array<i64: 1, 8, 8, 4>}, {transform_indices = @transform_3, window_bounds = array<i64: 1, 8, 8, 4>}, {transform_indices = @transform_4, window_bounds = array<i64: 1, 8, 8, 4>}]} {
    %c0 = arith.constant 0 : index
    %c0_0 = arith.constant 0 : index
    %c0_1 = arith.constant 0 : index
    %0 = vector.load %arg2[%c0, %c0_0, %c0_1] : memref<1x8x32xbf16, #tpu.memory_space<vmem>>, vector<1x8x32xbf16>
    %1 = vector.shape_cast %0 : vector<1x8x32xbf16> to vector<8x32xbf16>
    %c0_2 = arith.constant 0 : index
    %c0_3 = arith.constant 0 : index
    %2 = vector.load %arg3[%c0_2, %c0_3] : memref<32x96xbf16, #tpu.memory_space<vmem>>, vector<32x96xbf16>
    %cst = arith.constant dense<0.000000e+00> : vector<8x96xf32>
    %3 = tpu.matmul %1, %2, %cst {dimension_numbers = #tpu.dot_dimension_numbers<[1], [0], [0], [1], [0, 0, 1, 1], [], []>} : vector<8x32xbf16>, vector<32x96xbf16>, vector<8x96xf32> -> vector<8x96xf32>
    %4 = vector.extract_strided_slice %3 {offsets = [0, 0], sizes = [8, 4], strides = [1, 1]} : vector<8x96xf32> to vector<8x4xf32>
    %cst_4 = arith.constant 5.000000e-01 : f32
    %5 = vector.broadcast %cst_4 : f32 to vector<8x4xf32>
    %6 = arith.mulf %4, %5 : vector<8x4xf32>
    %7 = arith.truncf %6 : vector<8x4xf32> to vector<8x4xbf16>
    %c0_5 = arith.constant 0 : index
    %c0_6 = arith.constant 0 : index
    %c0_7 = arith.constant 0 : index
    %c0_8 = arith.constant 0 : index
    %8 = vector.load %arg4[%c0_5, %c0_6, %c0_7, %c0_8] : memref<1x8x8x4xbf16, #tpu.memory_space<vmem>>, vector<1x1x8x4xbf16>
    %9 = vector.shape_cast %8 : vector<1x1x8x4xbf16> to vector<8x4xbf16>
    %10 = vector.shape_cast %7 : vector<8x4xbf16> to vector<1x1x8x4xbf16>
    tpu.vector_store %arg4[%c0_5, %c0_6, %c0_7, %c0_8], %10 {strides = array<i32>} : memref<1x8x8x4xbf16, #tpu.memory_space<vmem>>, vector<1x1x8x4xbf16>,
    %11 = vector.extract_strided_slice %3 {offsets = [0, 32], sizes = [8, 4], strides = [1, 1]} : vector<8x96xf32> to vector<8x4xf32>
    %12 = arith.truncf %11 : vector<8x4xf32> to vector<8x4xbf16>
    %c0_9 = arith.constant 0 : index
    %c0_10 = arith.constant 0 : index
    %c0_11 = arith.constant 0 : index
    %c0_12 = arith.constant 0 : index
    %13 = vector.load %arg5[%c0_9, %c0_10, %c0_11, %c0_12] : memref<1x8x8x4xbf16, #tpu.memory_space<vmem>>, vector<1x1x8x4xbf16>
    %14 = vector.shape_cast %13 : vector<1x1x8x4xbf16> to vector<8x4xbf16>
    %15 = vector.shape_cast %12 : vector<8x4xbf16> to vector<1x1x8x4xbf16>
    tpu.vector_store %arg5[%c0_9, %c0_10, %c0_11, %c0_12], %15 {strides = array<i32>} : memref<1x8x8x4xbf16, #tpu.memory_space<vmem>>, vector<1x1x8x4xbf16>,
    %16 = vector.extract_strided_slice %3 {offsets = [0, 64], sizes = [8, 4], strides = [1, 1]} : vector<8x96xf32> to vector<8x4xf32>
    %17 = arith.truncf %16 : vector<8x4xf32> to vector<8x4xbf16>
    %c0_13 = arith.constant 0 : index
    %c0_14 = arith.constant 0 : index
    %c0_15 = arith.constant 0 : index
    %c0_16 = arith.constant 0 : index
    %18 = vector.load %arg6[%c0_13, %c0_14, %c0_15, %c0_16] : memref<1x8x8x4xbf16, #tpu.memory_space<vmem>>, vector<1x1x8x4xbf16>
    %19 = vector.shape_cast %18 : vector<1x1x8x4xbf16> to vector<8x4xbf16>
    %20 = vector.shape_cast %17 : vector<8x4xbf16> to vector<1x1x8x4xbf16>
    tpu.vector_store %arg6[%c0_13, %c0_14, %c0_15, %c0_16], %20 {strides = array<i32>} : memref<1x8x8x4xbf16, #tpu.memory_space<vmem>>, vector<1x1x8x4xbf16>,
    %21 = vector.extract_strided_slice %3 {offsets = [0, 4], sizes = [8, 4], strides = [1, 1]} : vector<8x96xf32> to vector<8x4xf32>
    %cst_17 = arith.constant 5.000000e-01 : f32
    %22 = vector.broadcast %cst_17 : f32 to vector<8x4xf32>
    %23 = arith.mulf %21, %22 : vector<8x4xf32>
    %24 = arith.truncf %23 : vector<8x4xf32> to vector<8x4xbf16>
    %c0_18 = arith.constant 0 : index
    %c1 = arith.constant 1 : index
    %c0_19 = arith.constant 0 : index
    %c0_20 = arith.constant 0 : index
    %25 = vector.load %arg4[%c0_18, %c1, %c0_19, %c0_20] : memref<1x8x8x4xbf16, #tpu.memory_space<vmem>>, vector<1x1x8x4xbf16>
    %26 = vector.shape_cast %25 : vector<1x1x8x4xbf16> to vector<8x4xbf16>
    %27 = vector.shape_cast %24 : vector<8x4xbf16> to vector<1x1x8x4xbf16>
    tpu.vector_store %arg4[%c0_18, %c1, %c0_19, %c0_20], %27 {strides = array<i32>} : memref<1x8x8x4xbf16, #tpu.memory_space<vmem>>, vector<1x1x8x4xbf16>,
    %28 = vector.extract_strided_slice %3 {offsets = [0, 36], sizes = [8, 4], strides = [1, 1]} : vector<8x96xf32> to vector<8x4xf32>
    %29 = arith.truncf %28 : vector<8x4xf32> to vector<8x4xbf16>
    %c0_21 = arith.constant 0 : index
    %c1_22 = arith.constant 1 : index
    %c0_23 = arith.constant 0 : index
    %c0_24 = arith.constant 0 : index
    %30 = vector.load %arg5[%c0_21, %c1_22, %c0_23, %c0_24] : memref<1x8x8x4xbf16, #tpu.memory_space<vmem>>, vector<1x1x8x4xbf16>
    %31 = vector.shape_cast %30 : vector<1x1x8x4xbf16> to vector<8x4xbf16>
    %32 = vector.shape_cast %29 : vector<8x4xbf16> to vector<1x1x8x4xbf16>
    tpu.vector_store %arg5[%c0_21, %c1_22, %c0_23, %c0_24], %32 {strides = array<i32>} : memref<1x8x8x4xbf16, #tpu.memory_space<vmem>>, vector<1x1x8x4xbf16>,
    %33 = vector.extract_strided_slice %3 {offsets = [0, 68], sizes = [8, 4], strides = [1, 1]} : vector<8x96xf32> to vector<8x4xf32>
    %34 = arith.truncf %33 : vector<8x4xf32> to vector<8x4xbf16>
    %c0_25 = arith.constant 0 : index
    %c1_26 = arith.constant 1 : index
    %c0_27 = arith.constant 0 : index
    %c0_28 = arith.constant 0 : index
    %35 = vector.load %arg6[%c0_25, %c1_26, %c0_27, %c0_28] : memref<1x8x8x4xbf16, #tpu.memory_space<vmem>>, vector<1x1x8x4xbf16>
    %36 = vector.shape_cast %35 : vector<1x1x8x4xbf16> to vector<8x4xbf16>
    %37 = vector.shape_cast %34 : vector<8x4xbf16> to vector<1x1x8x4xbf16>
    tpu.vector_store %arg6[%c0_25, %c1_26, %c0_27, %c0_28], %37 {strides = array<i32>} : memref<1x8x8x4xbf16, #tpu.memory_space<vmem>>, vector<1x1x8x4xbf16>,
    %38 = vector.extract_strided_slice %3 {offsets = [0, 8], sizes = [8, 4], strides = [1, 1]} : vector<8x96xf32> to vector<8x4xf32>
    %cst_29 = arith.constant 5.000000e-01 : f32
    %39 = vector.broadcast %cst_29 : f32 to vector<8x4xf32>
    %40 = arith.mulf %38, %39 : vector<8x4xf32>
    %41 = arith.truncf %40 : vector<8x4xf32> to vector<8x4xbf16>
    %c0_30 = arith.constant 0 : index
    %c2 = arith.constant 2 : index
    %c0_31 = arith.constant 0 : index
    %c0_32 = arith.constant 0 : index
    %42 = vector.load %arg4[%c0_30, %c2, %c0_31, %c0_32] : memref<1x8x8x4xbf16, #tpu.memory_space<vmem>>, vector<1x1x8x4xbf16>
    %43 = vector.shape_cast %42 : vector<1x1x8x4xbf16> to vector<8x4xbf16>
    %44 = vector.shape_cast %41 : vector<8x4xbf16> to vector<1x1x8x4xbf16>
    tpu.vector_store %arg4[%c0_30, %c2, %c0_31, %c0_32], %44 {strides = array<i32>} : memref<1x8x8x4xbf16, #tpu.memory_space<vmem>>, vector<1x1x8x4xbf16>,
    %45 = vector.extract_strided_slice %3 {offsets = [0, 40], sizes = [8, 4], strides = [1, 1]} : vector<8x96xf32> to vector<8x4xf32>
    %46 = arith.truncf %45 : vector<8x4xf32> to vector<8x4xbf16>
    %c0_33 = arith.constant 0 : index
    %c2_34 = arith.constant 2 : index
    %c0_35 = arith.constant 0 : index
    %c0_36 = arith.constant 0 : index
    %47 = vector.load %arg5[%c0_33, %c2_34, %c0_35, %c0_36] : memref<1x8x8x4xbf16, #tpu.memory_space<vmem>>, vector<1x1x8x4xbf16>
    %48 = vector.shape_cast %47 : vector<1x1x8x4xbf16> to vector<8x4xbf16>
    %49 = vector.shape_cast %46 : vector<8x4xbf16> to vector<1x1x8x4xbf16>
    tpu.vector_store %arg5[%c0_33, %c2_34, %c0_35, %c0_36], %49 {strides = array<i32>} : memref<1x8x8x4xbf16, #tpu.memory_space<vmem>>, vector<1x1x8x4xbf16>,
    %50 = vector.extract_strided_slice %3 {offsets = [0, 72], sizes = [8, 4], strides = [1, 1]} : vector<8x96xf32> to vector<8x4xf32>
    %51 = arith.truncf %50 : vector<8x4xf32> to vector<8x4xbf16>
    %c0_37 = arith.constant 0 : index
    %c2_38 = arith.constant 2 : index
    %c0_39 = arith.constant 0 : index
    %c0_40 = arith.constant 0 : index
    %52 = vector.load %arg6[%c0_37, %c2_38, %c0_39, %c0_40] : memref<1x8x8x4xbf16, #tpu.memory_space<vmem>>, vector<1x1x8x4xbf16>
    %53 = vector.shape_cast %52 : vector<1x1x8x4xbf16> to vector<8x4xbf16>
    %54 = vector.shape_cast %51 : vector<8x4xbf16> to vector<1x1x8x4xbf16>
    tpu.vector_store %arg6[%c0_37, %c2_38, %c0_39, %c0_40], %54 {strides = array<i32>} : memref<1x8x8x4xbf16, #tpu.memory_space<vmem>>, vector<1x1x8x4xbf16>,
    %55 = vector.extract_strided_slice %3 {offsets = [0, 12], sizes = [8, 4], strides = [1, 1]} : vector<8x96xf32> to vector<8x4xf32>
    %cst_41 = arith.constant 5.000000e-01 : f32
    %56 = vector.broadcast %cst_41 : f32 to vector<8x4xf32>
    %57 = arith.mulf %55, %56 : vector<8x4xf32>
    %58 = arith.truncf %57 : vector<8x4xf32> to vector<8x4xbf16>
    %c0_42 = arith.constant 0 : index
    %c3 = arith.constant 3 : index
    %c0_43 = arith.constant 0 : index
    %c0_44 = arith.constant 0 : index
    %59 = vector.load %arg4[%c0_42, %c3, %c0_43, %c0_44] : memref<1x8x8x4xbf16, #tpu.memory_space<vmem>>, vector<1x1x8x4xbf16>
    %60 = vector.shape_cast %59 : vector<1x1x8x4xbf16> to vector<8x4xbf16>
    %61 = vector.shape_cast %58 : vector<8x4xbf16> to vector<1x1x8x4xbf16>
    tpu.vector_store %arg4[%c0_42, %c3, %c0_43, %c0_44], %61 {strides = array<i32>} : memref<1x8x8x4xbf16, #tpu.memory_space<vmem>>, vector<1x1x8x4xbf16>,
    %62 = vector.extract_strided_slice %3 {offsets = [0, 44], sizes = [8, 4], strides = [1, 1]} : vector<8x96xf32> to vector<8x4xf32>
    %63 = arith.truncf %62 : vector<8x4xf32> to vector<8x4xbf16>
    %c0_45 = arith.constant 0 : index
    %c3_46 = arith.constant 3 : index
    %c0_47 = arith.constant 0 : index
    %c0_48 = arith.constant 0 : index
    %64 = vector.load %arg5[%c0_45, %c3_46, %c0_47, %c0_48] : memref<1x8x8x4xbf16, #tpu.memory_space<vmem>>, vector<1x1x8x4xbf16>
    %65 = vector.shape_cast %64 : vector<1x1x8x4xbf16> to vector<8x4xbf16>
    %66 = vector.shape_cast %63 : vector<8x4xbf16> to vector<1x1x8x4xbf16>
    tpu.vector_store %arg5[%c0_45, %c3_46, %c0_47, %c0_48], %66 {strides = array<i32>} : memref<1x8x8x4xbf16, #tpu.memory_space<vmem>>, vector<1x1x8x4xbf16>,
    %67 = vector.extract_strided_slice %3 {offsets = [0, 76], sizes = [8, 4], strides = [1, 1]} : vector<8x96xf32> to vector<8x4xf32>
    %68 = arith.truncf %67 : vector<8x4xf32> to vector<8x4xbf16>
    %c0_49 = arith.constant 0 : index
    %c3_50 = arith.constant 3 : index
    %c0_51 = arith.constant 0 : index
    %c0_52 = arith.constant 0 : index
    %69 = vector.load %arg6[%c0_49, %c3_50, %c0_51, %c0_52] : memref<1x8x8x4xbf16, #tpu.memory_space<vmem>>, vector<1x1x8x4xbf16>
    %70 = vector.shape_cast %69 : vector<1x1x8x4xbf16> to vector<8x4xbf16>
    %71 = vector.shape_cast %68 : vector<8x4xbf16> to vector<1x1x8x4xbf16>
    tpu.vector_store %arg6[%c0_49, %c3_50, %c0_51, %c0_52], %71 {strides = array<i32>} : memref<1x8x8x4xbf16, #tpu.memory_space<vmem>>, vector<1x1x8x4xbf16>,
    %72 = vector.extract_strided_slice %3 {offsets = [0, 16], sizes = [8, 4], strides = [1, 1]} : vector<8x96xf32> to vector<8x4xf32>
    %cst_53 = arith.constant 5.000000e-01 : f32
    %73 = vector.broadcast %cst_53 : f32 to vector<8x4xf32>
    %74 = arith.mulf %72, %73 : vector<8x4xf32>
    %75 = arith.truncf %74 : vector<8x4xf32> to vector<8x4xbf16>
    %c0_54 = arith.constant 0 : index
    %c4 = arith.constant 4 : index
    %c0_55 = arith.constant 0 : index
    %c0_56 = arith.constant 0 : index
    %76 = vector.load %arg4[%c0_54, %c4, %c0_55, %c0_56] : memref<1x8x8x4xbf16, #tpu.memory_space<vmem>>, vector<1x1x8x4xbf16>
    %77 = vector.shape_cast %76 : vector<1x1x8x4xbf16> to vector<8x4xbf16>
    %78 = vector.shape_cast %75 : vector<8x4xbf16> to vector<1x1x8x4xbf16>
    tpu.vector_store %arg4[%c0_54, %c4, %c0_55, %c0_56], %78 {strides = array<i32>} : memref<1x8x8x4xbf16, #tpu.memory_space<vmem>>, vector<1x1x8x4xbf16>,
    %79 = vector.extract_strided_slice %3 {offsets = [0, 48], sizes = [8, 4], strides = [1, 1]} : vector<8x96xf32> to vector<8x4xf32>
    %80 = arith.truncf %79 : vector<8x4xf32> to vector<8x4xbf16>
    %c0_57 = arith.constant 0 : index
    %c4_58 = arith.constant 4 : index
    %c0_59 = arith.constant 0 : index
    %c0_60 = arith.constant 0 : index
    %81 = vector.load %arg5[%c0_57, %c4_58, %c0_59, %c0_60] : memref<1x8x8x4xbf16, #tpu.memory_space<vmem>>, vector<1x1x8x4xbf16>
    %82 = vector.shape_cast %81 : vector<1x1x8x4xbf16> to vector<8x4xbf16>
    %83 = vector.shape_cast %80 : vector<8x4xbf16> to vector<1x1x8x4xbf16>
    tpu.vector_store %arg5[%c0_57, %c4_58, %c0_59, %c0_60], %83 {strides = array<i32>} : memref<1x8x8x4xbf16, #tpu.memory_space<vmem>>, vector<1x1x8x4xbf16>,
    %84 = vector.extract_strided_slice %3 {offsets = [0, 80], sizes = [8, 4], strides = [1, 1]} : vector<8x96xf32> to vector<8x4xf32>
    %85 = arith.truncf %84 : vector<8x4xf32> to vector<8x4xbf16>
    %c0_61 = arith.constant 0 : index
    %c4_62 = arith.constant 4 : index
    %c0_63 = arith.constant 0 : index
    %c0_64 = arith.constant 0 : index
    %86 = vector.load %arg6[%c0_61, %c4_62, %c0_63, %c0_64] : memref<1x8x8x4xbf16, #tpu.memory_space<vmem>>, vector<1x1x8x4xbf16>
    %87 = vector.shape_cast %86 : vector<1x1x8x4xbf16> to vector<8x4xbf16>
    %88 = vector.shape_cast %85 : vector<8x4xbf16> to vector<1x1x8x4xbf16>
    tpu.vector_store %arg6[%c0_61, %c4_62, %c0_63, %c0_64], %88 {strides = array<i32>} : memref<1x8x8x4xbf16, #tpu.memory_space<vmem>>, vector<1x1x8x4xbf16>,
    %89 = vector.extract_strided_slice %3 {offsets = [0, 20], sizes = [8, 4], strides = [1, 1]} : vector<8x96xf32> to vector<8x4xf32>
    %cst_65 = arith.constant 5.000000e-01 : f32
    %90 = vector.broadcast %cst_65 : f32 to vector<8x4xf32>
    %91 = arith.mulf %89, %90 : vector<8x4xf32>
    %92 = arith.truncf %91 : vector<8x4xf32> to vector<8x4xbf16>
    %c0_66 = arith.constant 0 : index
    %c5 = arith.constant 5 : index
    %c0_67 = arith.constant 0 : index
    %c0_68 = arith.constant 0 : index
    %93 = vector.load %arg4[%c0_66, %c5, %c0_67, %c0_68] : memref<1x8x8x4xbf16, #tpu.memory_space<vmem>>, vector<1x1x8x4xbf16>
    %94 = vector.shape_cast %93 : vector<1x1x8x4xbf16> to vector<8x4xbf16>
    %95 = vector.shape_cast %92 : vector<8x4xbf16> to vector<1x1x8x4xbf16>
    tpu.vector_store %arg4[%c0_66, %c5, %c0_67, %c0_68], %95 {strides = array<i32>} : memref<1x8x8x4xbf16, #tpu.memory_space<vmem>>, vector<1x1x8x4xbf16>,
    %96 = vector.extract_strided_slice %3 {offsets = [0, 52], sizes = [8, 4], strides = [1, 1]} : vector<8x96xf32> to vector<8x4xf32>
    %97 = arith.truncf %96 : vector<8x4xf32> to vector<8x4xbf16>
    %c0_69 = arith.constant 0 : index
    %c5_70 = arith.constant 5 : index
    %c0_71 = arith.constant 0 : index
    %c0_72 = arith.constant 0 : index
    %98 = vector.load %arg5[%c0_69, %c5_70, %c0_71, %c0_72] : memref<1x8x8x4xbf16, #tpu.memory_space<vmem>>, vector<1x1x8x4xbf16>
    %99 = vector.shape_cast %98 : vector<1x1x8x4xbf16> to vector<8x4xbf16>
    %100 = vector.shape_cast %97 : vector<8x4xbf16> to vector<1x1x8x4xbf16>
    tpu.vector_store %arg5[%c0_69, %c5_70, %c0_71, %c0_72], %100 {strides = array<i32>} : memref<1x8x8x4xbf16, #tpu.memory_space<vmem>>, vector<1x1x8x4xbf16>,
    %101 = vector.extract_strided_slice %3 {offsets = [0, 84], sizes = [8, 4], strides = [1, 1]} : vector<8x96xf32> to vector<8x4xf32>
    %102 = arith.truncf %101 : vector<8x4xf32> to vector<8x4xbf16>
    %c0_73 = arith.constant 0 : index
    %c5_74 = arith.constant 5 : index
    %c0_75 = arith.constant 0 : index
    %c0_76 = arith.constant 0 : index
    %103 = vector.load %arg6[%c0_73, %c5_74, %c0_75, %c0_76] : memref<1x8x8x4xbf16, #tpu.memory_space<vmem>>, vector<1x1x8x4xbf16>
    %104 = vector.shape_cast %103 : vector<1x1x8x4xbf16> to vector<8x4xbf16>
    %105 = vector.shape_cast %102 : vector<8x4xbf16> to vector<1x1x8x4xbf16>
    tpu.vector_store %arg6[%c0_73, %c5_74, %c0_75, %c0_76], %105 {strides = array<i32>} : memref<1x8x8x4xbf16, #tpu.memory_space<vmem>>, vector<1x1x8x4xbf16>,
    %106 = vector.extract_strided_slice %3 {offsets = [0, 24], sizes = [8, 4], strides = [1, 1]} : vector<8x96xf32> to vector<8x4xf32>
    %cst_77 = arith.constant 5.000000e-01 : f32
    %107 = vector.broadcast %cst_77 : f32 to vector<8x4xf32>
    %108 = arith.mulf %106, %107 : vector<8x4xf32>
    %109 = arith.truncf %108 : vector<8x4xf32> to vector<8x4xbf16>
    %c0_78 = arith.constant 0 : index
    %c6 = arith.constant 6 : index
    %c0_79 = arith.constant 0 : index
    %c0_80 = arith.constant 0 : index
    %110 = vector.load %arg4[%c0_78, %c6, %c0_79, %c0_80] : memref<1x8x8x4xbf16, #tpu.memory_space<vmem>>, vector<1x1x8x4xbf16>
    %111 = vector.shape_cast %110 : vector<1x1x8x4xbf16> to vector<8x4xbf16>
    %112 = vector.shape_cast %109 : vector<8x4xbf16> to vector<1x1x8x4xbf16>
    tpu.vector_store %arg4[%c0_78, %c6, %c0_79, %c0_80], %112 {strides = array<i32>} : memref<1x8x8x4xbf16, #tpu.memory_space<vmem>>, vector<1x1x8x4xbf16>,
    %113 = vector.extract_strided_slice %3 {offsets = [0, 56], sizes = [8, 4], strides = [1, 1]} : vector<8x96xf32> to vector<8x4xf32>
    %114 = arith.truncf %113 : vector<8x4xf32> to vector<8x4xbf16>
    %c0_81 = arith.constant 0 : index
    %c6_82 = arith.constant 6 : index
    %c0_83 = arith.constant 0 : index
    %c0_84 = arith.constant 0 : index
    %115 = vector.load %arg5[%c0_81, %c6_82, %c0_83, %c0_84] : memref<1x8x8x4xbf16, #tpu.memory_space<vmem>>, vector<1x1x8x4xbf16>
    %116 = vector.shape_cast %115 : vector<1x1x8x4xbf16> to vector<8x4xbf16>
    %117 = vector.shape_cast %114 : vector<8x4xbf16> to vector<1x1x8x4xbf16>
    tpu.vector_store %arg5[%c0_81, %c6_82, %c0_83, %c0_84], %117 {strides = array<i32>} : memref<1x8x8x4xbf16, #tpu.memory_space<vmem>>, vector<1x1x8x4xbf16>,
    %118 = vector.extract_strided_slice %3 {offsets = [0, 88], sizes = [8, 4], strides = [1, 1]} : vector<8x96xf32> to vector<8x4xf32>
    %119 = arith.truncf %118 : vector<8x4xf32> to vector<8x4xbf16>
    %c0_85 = arith.constant 0 : index
    %c6_86 = arith.constant 6 : index
    %c0_87 = arith.constant 0 : index
    %c0_88 = arith.constant 0 : index
    %120 = vector.load %arg6[%c0_85, %c6_86, %c0_87, %c0_88] : memref<1x8x8x4xbf16, #tpu.memory_space<vmem>>, vector<1x1x8x4xbf16>
    %121 = vector.shape_cast %120 : vector<1x1x8x4xbf16> to vector<8x4xbf16>
    %122 = vector.shape_cast %119 : vector<8x4xbf16> to vector<1x1x8x4xbf16>
    tpu.vector_store %arg6[%c0_85, %c6_86, %c0_87, %c0_88], %122 {strides = array<i32>} : memref<1x8x8x4xbf16, #tpu.memory_space<vmem>>, vector<1x1x8x4xbf16>,
    %123 = vector.extract_strided_slice %3 {offsets = [0, 28], sizes = [8, 4], strides = [1, 1]} : vector<8x96xf32> to vector<8x4xf32>
    %cst_89 = arith.constant 5.000000e-01 : f32
    %124 = vector.broadcast %cst_89 : f32 to vector<8x4xf32>
    %125 = arith.mulf %123, %124 : vector<8x4xf32>
    %126 = arith.truncf %125 : vector<8x4xf32> to vector<8x4xbf16>
    %c0_90 = arith.constant 0 : index
    %c7 = arith.constant 7 : index
    %c0_91 = arith.constant 0 : index
    %c0_92 = arith.constant 0 : index
    %127 = vector.load %arg4[%c0_90, %c7, %c0_91, %c0_92] : memref<1x8x8x4xbf16, #tpu.memory_space<vmem>>, vector<1x1x8x4xbf16>
    %128 = vector.shape_cast %127 : vector<1x1x8x4xbf16> to vector<8x4xbf16>
    %129 = vector.shape_cast %126 : vector<8x4xbf16> to vector<1x1x8x4xbf16>
    tpu.vector_store %arg4[%c0_90, %c7, %c0_91, %c0_92], %129 {strides = array<i32>} : memref<1x8x8x4xbf16, #tpu.memory_space<vmem>>, vector<1x1x8x4xbf16>,
    %130 = vector.extract_strided_slice %3 {offsets = [0, 60], sizes = [8, 4], strides = [1, 1]} : vector<8x96xf32> to vector<8x4xf32>
    %131 = arith.truncf %130 : vector<8x4xf32> to vector<8x4xbf16>
    %c0_93 = arith.constant 0 : index
    %c7_94 = arith.constant 7 : index
    %c0_95 = arith.constant 0 : index
    %c0_96 = arith.constant 0 : index
    %132 = vector.load %arg5[%c0_93, %c7_94, %c0_95, %c0_96] : memref<1x8x8x4xbf16, #tpu.memory_space<vmem>>, vector<1x1x8x4xbf16>
    %133 = vector.shape_cast %132 : vector<1x1x8x4xbf16> to vector<8x4xbf16>
    %134 = vector.shape_cast %131 : vector<8x4xbf16> to vector<1x1x8x4xbf16>
    tpu.vector_store %arg5[%c0_93, %c7_94, %c0_95, %c0_96], %134 {strides = array<i32>} : memref<1x8x8x4xbf16, #tpu.memory_space<vmem>>, vector<1x1x8x4xbf16>,
    %135 = vector.extract_strided_slice %3 {offsets = [0, 92], sizes = [8, 4], strides = [1, 1]} : vector<8x96xf32> to vector<8x4xf32>
    %136 = arith.truncf %135 : vector<8x4xf32> to vector<8x4xbf16>
    %c0_97 = arith.constant 0 : index
    %c7_98 = arith.constant 7 : index
    %c0_99 = arith.constant 0 : index
    %c0_100 = arith.constant 0 : index
    %137 = vector.load %arg6[%c0_97, %c7_98, %c0_99, %c0_100] : memref<1x8x8x4xbf16, #tpu.memory_space<vmem>>, vector<1x1x8x4xbf16>
    %138 = vector.shape_cast %137 : vector<1x1x8x4xbf16> to vector<8x4xbf16>
    %139 = vector.shape_cast %136 : vector<8x4xbf16> to vector<1x1x8x4xbf16>
    tpu.vector_store %arg6[%c0_97, %c7_98, %c0_99, %c0_100], %139 {strides = array<i32>} : memref<1x8x8x4xbf16, #tpu.memory_space<vmem>>, vector<1x1x8x4xbf16>,
    return
  }
  func.func @transform_0(%arg0: i32, %arg1: i32) -> (i32, i32, i32) {
    %c0_i32 = arith.constant 0 : i32
    %c0_i32_0 = arith.constant 0 : i32
    return %arg0, %arg1, %c0_i32 : i32, i32, i32
  }
  func.func @transform_1(%arg0: i32, %arg1: i32) -> (i32, i32) {
    %c0_i32 = arith.constant 0 : i32
    %c0_i32_0 = arith.constant 0 : i32
    %c0_i32_1 = arith.constant 0 : i32
    return %c0_i32, %c0_i32_0 : i32, i32
  }
  func.func @transform_2(%arg0: i32, %arg1: i32) -> (i32, i32, i32, i32) {
    %c0_i32 = arith.constant 0 : i32
    %c0_i32_0 = arith.constant 0 : i32
    %c0_i32_1 = arith.constant 0 : i32
    return %arg0, %c0_i32, %arg1, %c0_i32_0 : i32, i32, i32, i32
  }
  func.func @transform_3(%arg0: i32, %arg1: i32) -> (i32, i32, i32, i32) {
    %c0_i32 = arith.constant 0 : i32
    %c0_i32_0 = arith.constant 0 : i32
    %c0_i32_1 = arith.constant 0 : i32
    return %arg0, %c0_i32, %arg1, %c0_i32_0 : i32, i32, i32, i32
  }
  func.func @transform_4(%arg0: i32, %arg1: i32) -> (i32, i32, i32, i32) {
    %c0_i32 = arith.constant 0 : i32
    %c0_i32_0 = arith.constant 0 : i32
    %c0_i32_1 = arith.constant 0 : i32
    return %arg0, %c0_i32, %arg1, %c0_i32_0 : i32, i32, i32, i32
  }
}

</mosaic_0001>

<bundles_post_ra>
// kernel: tpu_custom_call.1
= control target key start
LH: loop header
LB: loop body
LE: loop exit
PB: predicated region body
PF: predicated region fallthrough
CT: control target
= control target key end

     0   :  { %10 = vsyncpa [#allocation3], 0  ;;  %s1179_s0 = inlined_call_operand.hbm [shape: bf16[2,8,32], index: 0, kind: input, shape index: {}]   ;;  %s1180_s1 = inlined_call_operand.hbm [shape: bf16[32,96], index: 1, kind: input, shape index: {}]   ;;  %s1181_s2 = inlined_call_operand.vmem [shape: bf16[2,8,8,4], index: 2, kind: output, shape index: {0}]   ;;  %s1182_s3 = inlined_call_operand.vmem [shape: bf16[2,8,8,4], index: 3, kind: output, shape index: {1}]   ;;  %s1183_s4 = inlined_call_operand.vmem [shape: bf16[2,8,8,4], index: 4, kind: output, shape index: {2}]  }
   0x1   :  { %12 = vsyncpa [#allocation3 + $0x1], 0 }
   0x2   :  { %13 = vsyncpa [#allocation5], 0  ;;  %s993_s15 = smov 0   ;;  %s995_s16 = smov 0  }
   0x3   :  { %s997_s17 = smov 0   ;;  %s999_s18 = smov 0  }
   0x4   :  { %s1001_s19 = smov 0   ;;  %s1003_s20 = smov 0  }
   0x5 LB: > { %s674_s21 = sadd.s32 4294967295, %s937_s20   ;;  %p53_p0 = scmp.ne.s32.totalorder %s921_s16, %s917_s15  ;;  %s937_s20 = sphi %s1003_s20, %s19_s20   ;;  %s933_s19 = sphi %s1001_s19, %s1193_s19   ;;  %s929_s18 = sphi %s999_s18, %s1192_s18   ;;  %s925_s17 = sphi %s997_s17, %s1191_s17   ;;  %s921_s16 = sphi %s995_s16, %s1190_s16   ;;  %s917_s15 = sphi %s993_s15, %s1189_s15  }
   0x6   : > { %p1023_p1 = scmp.eq.s32.totalorder %s674_s21, 0  ;;  %p676_p2 = scmp.ge.s32.totalorder %s937_s20, 1 }
   0x7   : > { %p169_p3 = scmp.lt.s32.totalorder %s937_s20, 3  ;;  %s939_s25 = smov [#allocation4]  }
   0x8   : > { %p1031_p4 = por %p1023_p1, %p53_p0  ;;  %s181_s26 = sshll.u32 %s939_s25, 4  ;;  %s182_s26 = int_to_ptr.vmem [resolvable:$true] %s181_s26 }
   0x9   : > { %p1035_p5 = pnand %p676_p2, %p169_p3  ;;  %s31_s28 = sadd.s32 1, %s933_s19 }
   0xa   : > { %s840_s29 = scalar_lea.vmem %s182_s26, 256  ;;  %p848_p12 = scmp.lt.s32.totalorder %s182_s26, %s182_s26 }
   0xb   : > { %p740_p6 = pneg %p1035_p5  ;;  %p841_p9 = scmp.ne.s32.totalorder %s182_s26, %s840_s29 }
   0xc   : > { %p849_p13 = scmp.lt.s32.totalorder %s840_s29, %s840_s29 }
   0xd   : > { %p1043_p7 = pnand %p740_p6, %p1023_p1 }
   0xe   : > { %p850_p0 = por %p849_p13, %p848_p12 }
   0xf   : > { %p831_p8 = pneg %p1043_p7 }
  0x11   : > { %p843_p10 = pnand %p841_p9, %p831_p8 }
  0x13   : > { %p844_p11 = pneg %p843_p10 }
  0x15   : > { %p851_p2 = pnand %p850_p0, %p844_p11 }
  0x17   : > { %854 = shalt.err (!%p851_p2)
}
  0x18   : > { %s940_s30 = smov 64   ;;  %s941_s5 = smov 4  }
  0x19   : > { %743 = dma.hbm_to_vmem [thread:$0]  (!%p1043_p7), %s1180_s1, 256, %s182_s26, [#allocation5], %s940_s30, %s940_s30, %s941_s5  }
  0x1a   : > { %p33_p3 = scmp.ge.s32.totalorder %s31_s28, 2  ;;  %s40_s8 = sadd.s32 1, %s925_s17 }
  0x1b   : > { %p47_p6 = scmp.ne.s32.totalorder %s925_s17, %s921_s16  ;;  %p48_p8 = scmp.eq.s32.totalorder %s937_s20, 0 }
  0x1c   : > { %s1195_s28 = smov (%p33_p3, %s31_s28), 0  ;;  %p749_p10 = scmp.lt.s32.totalorder %s937_s20, 2 }
  0x1d   : > { %p49_p9 = por %p48_p8, %p47_p6  ;;  %s35_s9 = ssub.s32 %s933_s19, %s1195_s28 }
  0x1e   : > { %s195_s10 = sand.u32 1, %s925_s17   ;;  %p38_p11 = scmp.eq.s32.totalorder %s35_s9, 0 }
  0x1f   : > { %s679_s11 = sshll.u32 %s195_s10, 2  ;;  %s680_s12 = sshll.u32 %s933_s19, 6 }
  0x20   : > { %s1067_s13 = scalar_select %p38_p11, %s925_s17, %s40_s8  }
  0x21   : > { %s205_s21 = scalar_lea.hbm %s1179_s0, %s680_s12  ;;  %s199_s25 = scalar_lea.vmem [#allocation2], %s679_s11 }
  0x22   : > { %s207_s26 = sshll.u32 %s199_s25, 4  ;;  %p1072_p7 = pnand %p749_p10, %p49_p9  ;;  %s208_s26 = int_to_ptr.vmem [resolvable:$true] %s207_s26 }
  0x23   : > { %s196_s29 = scalar_lea.sflag [#allocation3], %s195_s10  ;;  %s868_s30 = scalar_lea.vmem %s208_s26, 64 }
  0x24   : > { %p857_p12 = pneg %p1072_p7  ;;  %p869_p13 = scmp.ne.s32.totalorder %s208_s26, %s868_s30 }
  0x25   : > { %s942_s5 = smov [#allocation2]  }
  0x26   : > { %p871_p0 = pnand %p869_p13, %p857_p12  ;;  %s873_s6 = sshll.u32 %s942_s5, 4  ;;  %s874_s6 = int_to_ptr.vmem [resolvable:$false] %s873_s6 }
  0x27   : > { %s875_s7 = scalar_lea.vmem %s874_s6, 128  ;;  %p876_p3 = scmp.lt.s32.totalorder %s208_s26, %s874_s6 }
  0x28   : > { %p872_p2 = pneg %p871_p0  ;;  %p877_p6 = scmp.lt.s32.totalorder %s875_s7, %s868_s30 }
  0x2a   : > { %p878_p8 = por %p877_p6, %p876_p3 }
  0x2c   : > { %p879_p9 = pnand %p878_p8, %p872_p2 }
  0x2e   : > { %882 = shalt.err (!%p879_p9)
}
  0x2f   : > { %747 = dma.hbm_to_vmem [thread:$0]  (!%p1072_p7), %s205_s21, 64, %s208_s26, %s196_s29  }
  0x30   : > { %216 = sbr.rel (%p1035_p5) target bundleno = 420 (0x1a4), region = 28  ;;  %s218_s8 = sand.u32 (!%p1035_p5), 1, %s921_s16  }
  0x31   : > { %s682_s9 = sshll.u32 (!%p1035_p5), %s218_s8, 2  ;;  %s219_s10 = scalar_lea.sflag (!%p1035_p5), [#allocation3], %s218_s8 }
  0x32   : > { %s222_s11 = scalar_lea.vmem (!%p1035_p5), [#allocation2], %s682_s9 }
  0x35   : > { %908 = dma.done.wait (%p1031_p4), %s219_s10, 64  }
  0x36   : > { %910 = vsyncadd (%p1031_p4), %s219_s10, 4294967232 }
  0x37   : > { %912 = dma.done.wait (%p1023_p1), [#allocation5], 256  }
  0x38   : > { %914 = vsyncadd (%p1023_p1), [#allocation5], 4294967040  ;;  %v943_v0 = vmov 0.0   ;;  %vm944_vm0 = vmmov 0   ;;  %v827_v1 = vld [vmem:[#allocation4 + $0x8] sm:$0xff]   ;;  %v828_v2 = vld [vmem:[#allocation4] sm:$0xff]  }
  0x39   : > { %726 = vmatprep.subr.bf16.mxu0 %v943_v0  ;;  %730 = vmatprep.mubr.msk.bf16.mxu0 %vm944_vm0, %v943_v0  ;;  %v295_v3 = vld [vmem:[%s222_s11] sm:$0xf]  ;;  %vm312_vm1 = vcmask 261120   ;;  %p270_p4 = scmp.lt.s32.totalorder %s929_s18, 1  ;;  %vm358_vm2 = vcmask 27648   ;;  %s945_s14 = smov 92  }
  0x3a   : > { %727 = vmatpush3.bf16.msra.mxu0 %v827_v1  ;;  %s946_s15 = smov 96   ;;  %s948_s21 = smov 64  }
  0x3b   : > { %728 = vmatprep.subr.bf16.mxu0 %v943_v0  ;;  %s1197_s18 = smov (!%p270_p4, %s929_s18), 1  ;;  %s949_s25 = smov 84  }
  0x3c   : > { %s1093_s23 = sshll.u32 %s1197_s18, 5  ;;  %s947_s18 = smov 56  }
  0x3d   : > { %s1099_s12 = scalar_lea.vmem %s1181_s2, %s1093_s23  ;;  %s950_s26 = smov 60  }
  0x3e   : > { %729 = vmatpush3.bf16.msra.mxu0 %v828_v2  ;;  %s951_s27 = smov 48   ;;  %s952_s29 = smov 88  }
  0x3f   : > { %s953_s30 = smov 76   ;;  %s954_s5 = smov 52  }
  0x40   : > { %s955_s6 = smov 40   ;;  %s956_s7 = smov 80  }
  0x41   : > { %731 = vmatmul.mubr.msk.bf16.vlgmr.msra.gmra.mxu0 %vm312_vm1, %v295_v3  ;;  %s957_s8 = smov 44   ;;  %s958_s9 = smov 124  }
  0x42   : > { %s959_s10 = smov 72   ;;  %s960_s11 = smov 120  }
  0x43   : > { %s961_s22 = smov 116   ;;  %s962_s24 = smov 112  }
 0x101   : > { %v350_v4 = vpop.f32.mrf.mxu0 }
 0x102   : > { %v356_v5 = vmul.f32 0.5, %v350_v4  ;;  %v721_v6 = vpack.c.bf16 %v350_v4, %v350_v4 }
 0x103   : > { %v732_v7 = vpop.f32.mrf.mxu0 }
 0x104   : > { %v357_v8 = vpack.c.bf16 %v356_v5, %v356_v5  ;;  %380 = vrot.lane.b32.xlu1 %v721_v6, %s945_s14  ;;  %364 = vrot.lane.b32.xlu0 %v721_v6, %s946_s15  ;;  %s963_s14 = smov 108   ;;  %s964_s15 = smov 104  }
 0x105   : > { %v353_v9 = vpop.f32.mrf.mxu0 }
 0x106   : > { %359 = vst.msk [vmem:[%s1099_s12] sm:$0xf] %vm358_vm2, %v357_v8 }
 0x107   : > { %v733_v10 = vpop.f32.mrf.mxu0 }
 0x108   : > { %400 = vrot.lane.b32.xlu1 %v721_v6, %s947_s18  ;;  %368 = vrot.lane.b32.xlu0 %v721_v6, %s948_s21  ;;  %s965_s18 = smov 100   ;;  %s966_s21 = smov 68  }
 0x10c   : > { %410 = vrot.lane.b32.xlu1 %v721_v6, %s949_s25  ;;  %385 = vrot.lane.b32.xlu0 %v721_v6, %s950_s26  ;;  %s967_s25 = smov 36  }
 0x110   : > { %430 = vrot.lane.b32.xlu1 %v721_v6, %s951_s27  ;;  %395 = vrot.lane.b32.xlu0 %v721_v6, %s952_s29  ;;  %s1107_s29 = scalar_lea.vmem %s1182_s3, %s1093_s23 }
 0x114   : > { %440 = vrot.lane.b32.xlu1 %v721_v6, %s953_s30  ;;  %415 = vrot.lane.b32.xlu0 %v721_v6, %s954_s5 }
 0x118   : > { %460 = vrot.lane.b32.xlu1 %v721_v6, %s955_s6  ;;  %425 = vrot.lane.b32.xlu0 %v721_v6, %s956_s7  ;;  %s1117_s6 = scalar_lea.vmem %s1183_s4, %s1093_s23 }
 0x11c   : > { %445 = vrot.lane.b32.xlu0 %v721_v6, %s957_s8  ;;  %375 = vrot.lane.b32.xlu1 %v357_v8, %s958_s9 }
 0x120   : > { %455 = vrot.lane.b32.xlu0 %v721_v6, %s959_s10  ;;  %390 = vrot.lane.b32.xlu1 %v357_v8, %s960_s11 }
 0x124   : > { %405 = vrot.lane.b32.xlu0 %v357_v8, %s961_s22  ;;  %420 = vrot.lane.b32.xlu1 %v357_v8, %s962_s24 }
 0x128   : > { %435 = vrot.lane.b32.xlu0 %v357_v8, %s963_s14  ;;  %450 = vrot.lane.b32.xlu1 %v357_v8, %s964_s15 }
 0x12c   : > { %465 = vrot.lane.b32.xlu0 %v357_v8, %s965_s18  ;;  %470 = vrot.lane.b32.xlu1 %v721_v6, %s966_s21 }
 0x130   : > { %475 = vrot.lane.b32.xlu0 %v721_v6, %s967_s25 }
 0x176   : > { %v381_v11 = vpop.permute.xlu1 %380  ;;  %v365_v12 = vpop.permute.xlu0 %364 }
 0x177   : > { %696 = vst.msk [vmem:[%s1107_s29 + $0x4] sm:$0xf] %vm358_vm2, %v381_v11  ;;  %367 = vst.msk [vmem:[%s1107_s29] sm:$0xf] %vm358_vm2, %v365_v12 }
 0x17a   : > { %v401_v13 = vpop.permute.xlu1 %400  ;;  %v369_v14 = vpop.permute.xlu0 %368 }
 0x17b   : > { %700 = vst.msk [vmem:[%s1117_s6 + $0x8] sm:$0xf] %vm358_vm2, %v401_v13  ;;  %371 = vst.msk [vmem:[%s1117_s6] sm:$0xf] %vm358_vm2, %v369_v14 }
 0x17e   : > { %v411_v15 = vpop.permute.xlu1 %410  ;;  %v386_v16 = vpop.permute.xlu0 %385 }
 0x17f   : > { %702 = vst.msk [vmem:[%s1107_s29 + $0xc] sm:$0xf] %vm358_vm2, %v411_v15  ;;  %697 = vst.msk [vmem:[%s1117_s6 + $0x4] sm:$0xf] %vm358_vm2, %v386_v16 }
 0x182   : > { %v431_v17 = vpop.permute.xlu1 %430  ;;  %v396_v18 = vpop.permute.xlu0 %395 }
 0x183   : > { %706 = vst.msk [vmem:[%s1117_s6 + $0x10] sm:$0xf] %vm358_vm2, %v431_v17  ;;  %699 = vst.msk [vmem:[%s1107_s29 + $0x8] sm:$0xf] %vm358_vm2, %v396_v18 }
 0x186   : > { %v441_v19 = vpop.permute.xlu1 %440  ;;  %v416_v20 = vpop.permute.xlu0 %415 }
 0x187   : > { %708 = vst.msk [vmem:[%s1107_s29 + $0x14] sm:$0xf] %vm358_vm2, %v441_v19  ;;  %703 = vst.msk [vmem:[%s1117_s6 + $0xc] sm:$0xf] %vm358_vm2, %v416_v20 }
 0x18a   : > { %v461_v21 = vpop.permute.xlu1 %460  ;;  %v426_v22 = vpop.permute.xlu0 %425 }
 0x18b   : > { %712 = vst.msk [vmem:[%s1117_s6 + $0x18] sm:$0xf] %vm358_vm2, %v461_v21  ;;  %705 = vst.msk [vmem:[%s1107_s29 + $0x10] sm:$0xf] %vm358_vm2, %v426_v22 }
 0x18e   : > { %v446_v23 = vpop.permute.xlu0 %445  ;;  %v376_v24 = vpop.permute.xlu1 %375 }
 0x18f   : > { %709 = vst.msk [vmem:[%s1117_s6 + $0x14] sm:$0xf] %vm358_vm2, %v446_v23  ;;  %695 = vst.msk [vmem:[%s1099_s12 + $0x4] sm:$0xf] %vm358_vm2, %v376_v24 }
 0x192   : > { %v456_v25 = vpop.permute.xlu0 %455  ;;  %v391_v26 = vpop.permute.xlu1 %390 }
 0x193   : > { %711 = vst.msk [vmem:[%s1107_s29 + $0x18] sm:$0xf] %vm358_vm2, %v456_v25  ;;  %698 = vst.msk [vmem:[%s1099_s12 + $0x8] sm:$0xf] %vm358_vm2, %v391_v26 }
 0x196   : > { %v406_v27 = vpop.permute.xlu0 %405  ;;  %v421_v28 = vpop.permute.xlu1 %420 }
 0x197   : > { %701 = vst.msk [vmem:[%s1099_s12 + $0xc] sm:$0xf] %vm358_vm2, %v406_v27  ;;  %704 = vst.msk [vmem:[%s1099_s12 + $0x10] sm:$0xf] %vm358_vm2, %v421_v28 }
 0x19a   : > { %v436_v29 = vpop.permute.xlu0 %435  ;;  %v451_v30 = vpop.permute.xlu1 %450 }
 0x19b   : > { %707 = vst.msk [vmem:[%s1099_s12 + $0x14] sm:$0xf] %vm358_vm2, %v436_v29  ;;  %710 = vst.msk [vmem:[%s1099_s12 + $0x18] sm:$0xf] %vm358_vm2, %v451_v30 }
 0x19e   : > { %v466_v31 = vpop.permute.xlu0 %465  ;;  %v471_v32 = vpop.permute.xlu1 %470 }
 0x19f   : > { %713 = vst.msk [vmem:[%s1099_s12 + $0x1c] sm:$0xf] %vm358_vm2, %v466_v31  ;;  %714 = vst.msk [vmem:[%s1107_s29 + $0x1c] sm:$0xf] %vm358_vm2, %v471_v32 }
 0x1a2   : > { %v476_v33 = vpop.permute.xlu0 %475 }
 0x1a3   : > { %715 = vst.msk [vmem:[%s1117_s6 + $0x1c] sm:$0xf] %vm358_vm2, %v476_v33 }
 0x1a4 PF: > { %s19_s20 = sadd.s32 1, %s937_s20   ;;  %s1189_s15 = smov %s921_s16 }
 0x1a5   : > { %p16_p1 = scmp.ge.s32.totalorder %s19_s20, 4   ;;  %s1190_s16 = smov %s925_s17 }
 0x1a6   : > { %s1191_s17 = smov %s1067_s13  ;;  %s1192_s18 = smov %s933_s19 }
 0x1a7   : > { %s1193_s19 = smov %s1195_s28  ;;  %18 = sbr.rel (!%p16_p1) target bundleno = 5 (0x5), region = 117 }
 0x1ac   :  { %551 = vsyncpa [#allocation3], 1 }
 0x1ad   :  { %553 = vsyncpa [#allocation3 + $0x1], 1 }
 0x1ae   :  { %554 = vsyncpa [#allocation5], 1 }

</bundles_post_ra>
